<compile_context>
chip_gen: v5e
topology: v5e:2x2
jax: 0.10.0
libtpu: 0.0.40
codegen_flags: <defaults>
</compile_context>

<pallas_src>
import functools

import jax
import jax.numpy as jnp
from jax.experimental import pallas as pl
from jax.experimental.pallas import tpu as pltpu


def _round_up(x, m):
    return ((x + m - 1) // m) * m


def _time_chunk(seq_len):
    """Largest multiple-of-8 divisor of S (capped at 32); else a single chunk."""
    if seq_len % 8 != 0:
        return seq_len
    for cand in (32, 24, 16, 8):
        if seq_len % cand == 0:
            return cand
    return 8


def _rnn_kernel(x_ref, wxh_ref, whh_ref, bias_ref,     # inputs
                hseq_ref, hlast_ref,                   # outputs
                h_ref,                                 # VMEM scratch (carry)
                *, chunk_proj):
    """One (batch-tile, time-chunk) grid step of the masked RNN.

    x_ref    : (Bb, St, Ip) padded input chunk
    wxh_ref  : (Ip, Hp)     pre-masked input->hidden weights (resident)
    whh_ref  : (Hp, Hp)     pre-masked hidden->hidden weights (resident)
    bias_ref : (1, Hp)      combined bias b_xh + b_hh (resident)
    hseq_ref : (Bb, St, Hp) hidden states for this chunk, (B,S,H) layout
    hlast_ref: (Bb, Hp)     final hidden state (written on last time chunk)
    h_ref    : (Bb, Hp) f32 hidden-state carry across time chunks
    """
    s = pl.program_id(1)

    @pl.when(s == 0)
    def _init():
        h_ref[...] = jnp.zeros_like(h_ref)

    Bb, St, Ip = x_ref.shape
    Hp = whh_ref.shape[0]

    whh = whh_ref[...]
    wxh = wxh_ref[...]
    bias = bias_ref[...]
    x = x_ref[...].astype(jnp.float32)

    if chunk_proj:
        # Fused input projection for the whole chunk: one big MXU matmul with
        # no sequential dependence (overlaps with the recurrence below).
        xproj = (jnp.dot(x.reshape(Bb * St, Ip), wxh,
                         preferred_element_type=jnp.float32) + bias
                 ).reshape(Bb, St, Hp)

    h = h_ref[...]
    for t in range(St):                      # short static unroll (St <= 32)
        if chunk_proj:
            xp_t = xproj[:, t, :]
        else:
            xp_t = jnp.dot(x[:, t, :], wxh,
                           preferred_element_type=jnp.float32) + bias
        h = jnp.tanh(xp_t + jnp.dot(h, whh,
                                    preferred_element_type=jnp.float32))
        hseq_ref[:, pl.ds(t, 1), :] = h[:, None, :].astype(hseq_ref.dtype)

    h_ref[...] = h                           # carry to the next time chunk

    @pl.when(s == pl.num_programs(1) - 1)
    def _finalize():
        hlast_ref[...] = h.astype(hlast_ref.dtype)


@jax.jit
def masked_neural_rnn(x, w_xh, b_xh, w_hh, b_hh, input_mask, hidden_mask):
    """x: (B, S, I) -> (h_seq: (B, S, H), h_last: (B, H)).

    Weights stored as (in_features, out_features) == mask layout
    (the transpose of torch nn.Linear's weight).
    """
    B, S, I = x.shape
    H = w_hh.shape[0]

    # Fold the call-constant masks into the weights once, combine the biases.
    wxh_m = (w_xh * input_mask).astype(jnp.float32)
    whh_m = (w_hh * hidden_mask).astype(jnp.float32)
    bias = (b_xh + b_hh).reshape(1, H).astype(jnp.float32)

    # Lane/sublane padding: H, I -> multiples of 128 lanes, B -> multiple of 8
    # sublanes.  Zero padding is inert (padded weight rows/cols, bias lanes and
    # x columns are zero, so padded hidden lanes stay exactly 0).
    Bp = _round_up(B, 8)
    Ip = _round_up(I, 128)
    Hp = _round_up(H, 128)
    St = _time_chunk(S)
    # Two batch tiles when batch is big enough -> both TensorCores on v7x.
    Bb = Bp // 2 if (Bp >= 16 and Bp % 16 == 0) else Bp

    x_p = jnp.zeros((Bp, S, Ip), jnp.float32).at[:B, :, :I].set(
        x.astype(jnp.float32))
    wxh_p = jnp.zeros((Ip, Hp), jnp.float32).at[:I, :H].set(wxh_m)
    whh_p = jnp.zeros((Hp, Hp), jnp.float32).at[:H, :H].set(whh_m)
    bias_p = jnp.zeros((1, Hp), jnp.float32).at[:, :H].set(bias)

    grid = (Bp // Bb, S // St)
    kernel = functools.partial(_rnn_kernel, chunk_proj=(St % 8 == 0))

    hseq_p, hlast_p = pl.pallas_call(
        kernel,
        out_shape=(jax.ShapeDtypeStruct((Bp, S, Hp), x.dtype),
                   jax.ShapeDtypeStruct((Bp, Hp), x.dtype)),
        grid=grid,
        in_specs=[
            pl.BlockSpec((Bb, St, Ip), lambda b, s: (b, s, 0)),   # x chunk
            pl.BlockSpec((Ip, Hp), lambda b, s: (0, 0)),          # W_xh (resident)
            pl.BlockSpec((Hp, Hp), lambda b, s: (0, 0)),          # W_hh (resident)
            pl.BlockSpec((1, Hp), lambda b, s: (0, 0)),           # bias (resident)
        ],
        out_specs=(
            pl.BlockSpec((Bb, St, Hp), lambda b, s: (b, s, 0)),   # h_seq (B,S,H)
            pl.BlockSpec((Bb, Hp), lambda b, s: (b, 0)),          # h_last
        ),
        scratch_shapes=[pltpu.VMEM((Bb, Hp), jnp.float32)],       # h carry
        compiler_params=pltpu.CompilerParams(
            dimension_semantics=("parallel", "arbitrary"),
            vmem_limit_bytes=32 * 1024 * 1024),
    )(x_p, wxh_p, whh_p, bias_p)

    return hseq_p[:B, :, :H], hlast_p[:B, :H]


def _reference(x, w_xh, b_xh, w_hh, b_hh, input_mask, hidden_mask):
    """Pure-JAX reference matching the PyTorch forward."""
    H = w_hh.shape[0]
    wxh = w_xh * input_mask
    whh = w_hh * hidden_mask

    def step(h, x_t):
        h_new = jnp.tanh(x_t @ wxh + b_xh + h @ whh + b_hh)
        return h_new, h_new

    h0 = jnp.zeros((x.shape[0], H), x.dtype)
    h_last, h_seq = jax.lax.scan(step, h0, jnp.transpose(x, (1, 0, 2)))
    return jnp.transpose(h_seq, (1, 0, 2)), h_last


if __name__ == "__main__":
    B, S, I, H = 2, 8, 16, 32
    key = jax.random.PRNGKey(0)
    kx, kwx, kbx, kwh, kbh, kmx, kmh = jax.random.split(key, 7)

    x = jax.random.normal(kx, (B, S, I), dtype=jnp.float32)

    # Deterministic parameter init; weights stored (in_features, out_features).
    w_xh = jax.random.normal(kwx, (I, H), dtype=jnp.float32) * (1.0 / jnp.sqrt(I))
    b_xh = jax.random.normal(kbx, (1, H), dtype=jnp.float32) * 0.1
    w_hh = jax.random.normal(kwh, (H, H), dtype=jnp.float32) * (1.0 / jnp.sqrt(H))
    b_hh = jax.random.normal(kbh, (1, H), dtype=jnp.float32) * 0.1

    # Binary masks, as in CustomizedLinear.
    input_mask = (jax.random.uniform(kmx, (I, H)) > 0.5).astype(jnp.float32)
    hidden_mask = (jax.random.uniform(kmh, (H, H)) > 0.5).astype(jnp.float32)

    h_seq, h_last = masked_neural_rnn(x, w_xh, b_xh, w_hh, b_hh,
                                      input_mask, hidden_mask)
    jax.block_until_ready((h_seq, h_last))

    h_seq_ref, h_last_ref = _reference(x, w_xh, b_xh, w_hh, b_hh,
                                       input_mask, hidden_mask)
    assert h_seq.shape == (B, S, H) and h_last.shape == (B, H)
    assert jnp.allclose(h_seq, h_seq_ref, atol=1e-5, rtol=1e-5)
    assert jnp.allclose(h_last, h_last_ref, atol=1e-5, rtol=1e-5)

    print("KERNEL_OK")
</pallas_src>

<mosaic_0001>
module attributes {stable_mosaic.version = 11 : i64} {
  func.func @_rnn_kernel(%arg0: i32, %arg1: i32, %arg2: memref<8x8x128xf32, #tpu.memory_space<vmem>>, %arg3: memref<128x128xf32, #tpu.memory_space<vmem>>, %arg4: memref<128x128xf32, #tpu.memory_space<vmem>>, %arg5: memref<1x128xf32, #tpu.memory_space<vmem>>, %arg6: memref<8x8x128xf32, #tpu.memory_space<vmem>>, %arg7: memref<8x128xf32, #tpu.memory_space<vmem>>, %arg8: memref<8x128xf32, #tpu.memory_space<vmem>>) attributes {dimension_semantics = [#tpu.dimension_semantics<parallel>, #tpu.dimension_semantics<arbitrary>], iteration_bounds = array<i64: 1, 1>, scalar_prefetch = 0 : i64, scratch_operands = 1 : i64, tpu.core_type = #tpu.core_type<tc>, window_params = [{transform_indices = @transform_0, window_bounds = array<i64: 8, 8, 128>}, {pipeline_mode = #tpu.pipeline_mode<synchronous>, transform_indices = @transform_1, window_bounds = array<i64: 128, 128>}, {pipeline_mode = #tpu.pipeline_mode<synchronous>, transform_indices = @transform_2, window_bounds = array<i64: 128, 128>}, {pipeline_mode = #tpu.pipeline_mode<synchronous>, transform_indices = @transform_3, window_bounds = array<i64: 1, 128>}, {transform_indices = @transform_4, window_bounds = array<i64: 8, 8, 128>}, {transform_indices = @transform_5, window_bounds = array<i64: 8, 128>}]} {
    %c0_i32 = arith.constant 0 : i32
    %0 = arith.cmpi eq, %arg1, %c0_i32 : i32
    %1 = arith.extui %0 : i1 to i32
    %c0_i32_0 = arith.constant 0 : i32
    %2 = arith.cmpi ne, %1, %c0_i32_0 : i32
    scf.if %2 {
      %cst_40 = arith.constant 0.000000e+00 : f32
      %73 = vector.broadcast %cst_40 : f32 to vector<8x128xf32>
      %c0_41 = arith.constant 0 : index
      %c0_42 = arith.constant 0 : index
      %74 = vector.load %arg8[%c0_41, %c0_42] : memref<8x128xf32, #tpu.memory_space<vmem>>, vector<8x128xf32>
      tpu.vector_store %arg8[%c0_41, %c0_42], %73 {strides = array<i32>} : memref<8x128xf32, #tpu.memory_space<vmem>>, vector<8x128xf32>,
    } else {
    }
    %c0 = arith.constant 0 : index
    %c0_1 = arith.constant 0 : index
    %3 = vector.load %arg4[%c0, %c0_1] : memref<128x128xf32, #tpu.memory_space<vmem>>, vector<128x128xf32>
    %c0_2 = arith.constant 0 : index
    %c0_3 = arith.constant 0 : index
    %4 = vector.load %arg3[%c0_2, %c0_3] : memref<128x128xf32, #tpu.memory_space<vmem>>, vector<128x128xf32>
    %c0_4 = arith.constant 0 : index
    %c0_5 = arith.constant 0 : index
    %5 = vector.load %arg5[%c0_4, %c0_5] : memref<1x128xf32, #tpu.memory_space<vmem>>, vector<1x128xf32>
    %c0_6 = arith.constant 0 : index
    %c0_7 = arith.constant 0 : index
    %c0_8 = arith.constant 0 : index
    %6 = vector.load %arg2[%c0_6, %c0_7, %c0_8] : memref<8x8x128xf32, #tpu.memory_space<vmem>>, vector<8x8x128xf32>
    %7 = vector.shape_cast %6 : vector<8x8x128xf32> to vector<64x128xf32>
    %cst = arith.constant dense<0.000000e+00> : vector<64x128xf32>
    %8 = tpu.matmul %7, %4, %cst {dimension_numbers = #tpu.dot_dimension_numbers<[1], [0], [0], [1], [0, 0, 1, 1], [], []>} : vector<64x128xf32>, vector<128x128xf32>, vector<64x128xf32> -> vector<64x128xf32>
    %9 = vector.broadcast %5 : vector<1x128xf32> to vector<64x128xf32>
    %10 = arith.addf %8, %9 : vector<64x128xf32>
    %11 = vector.shape_cast %10 : vector<64x128xf32> to vector<8x8x128xf32>
    %c0_9 = arith.constant 0 : index
    %c0_10 = arith.constant 0 : index
    %12 = vector.load %arg8[%c0_9, %c0_10] : memref<8x128xf32, #tpu.memory_space<vmem>>, vector<8x128xf32>
    %13 = vector.extract_strided_slice %11 {offsets = [0, 0, 0], sizes = [8, 1, 128], strides = [1, 1, 1]} : vector<8x8x128xf32> to vector<8x1x128xf32>
    %14 = vector.shape_cast %13 : vector<8x1x128xf32> to vector<8x128xf32>
    %cst_11 = arith.constant dense<0.000000e+00> : vector<8x128xf32>
    %15 = tpu.matmul %12, %3, %cst_11 {dimension_numbers = #tpu.dot_dimension_numbers<[1], [0], [0], [1], [0, 0, 1, 1], [], []>} : vector<8x128xf32>, vector<128x128xf32>, vector<8x128xf32> -> vector<8x128xf32>
    %16 = arith.addf %14, %15 : vector<8x128xf32>
    %17 = math.tanh %16 : vector<8x128xf32>
    %18 = vector.shape_cast %17 : vector<8x128xf32> to vector<8x1x128xf32>
    %c0_12 = arith.constant 0 : index
    %c0_13 = arith.constant 0 : index
    %c0_14 = arith.constant 0 : index
    %19 = vector.load %arg6[%c0_12, %c0_13, %c0_14] : memref<8x8x128xf32, #tpu.memory_space<vmem>>, vector<8x1x128xf32>
    tpu.vector_store %arg6[%c0_12, %c0_13, %c0_14], %18 {strides = array<i32>} : memref<8x8x128xf32, #tpu.memory_space<vmem>>, vector<8x1x128xf32>,
    %20 = vector.extract_strided_slice %11 {offsets = [0, 1, 0], sizes = [8, 1, 128], strides = [1, 1, 1]} : vector<8x8x128xf32> to vector<8x1x128xf32>
    %21 = vector.shape_cast %20 : vector<8x1x128xf32> to vector<8x128xf32>
    %cst_15 = arith.constant dense<0.000000e+00> : vector<8x128xf32>
    %22 = tpu.matmul %17, %3, %cst_15 {dimension_numbers = #tpu.dot_dimension_numbers<[1], [0], [0], [1], [0, 0, 1, 1], [], []>} : vector<8x128xf32>, vector<128x128xf32>, vector<8x128xf32> -> vector<8x128xf32>
    %23 = arith.addf %21, %22 : vector<8x128xf32>
    %24 = math.tanh %23 : vector<8x128xf32>
    %25 = vector.shape_cast %24 : vector<8x128xf32> to vector<8x1x128xf32>
    %c0_16 = arith.constant 0 : index
    %c1 = arith.constant 1 : index
    %c0_17 = arith.constant 0 : index
    %26 = vector.load %arg6[%c0_16, %c1, %c0_17] : memref<8x8x128xf32, #tpu.memory_space<vmem>>, vector<8x1x128xf32>
    tpu.vector_store %arg6[%c0_16, %c1, %c0_17], %25 {strides = array<i32>} : memref<8x8x128xf32, #tpu.memory_space<vmem>>, vector<8x1x128xf32>,
    %27 = vector.extract_strided_slice %11 {offsets = [0, 2, 0], sizes = [8, 1, 128], strides = [1, 1, 1]} : vector<8x8x128xf32> to vector<8x1x128xf32>
    %28 = vector.shape_cast %27 : vector<8x1x128xf32> to vector<8x128xf32>
    %cst_18 = arith.constant dense<0.000000e+00> : vector<8x128xf32>
    %29 = tpu.matmul %24, %3, %cst_18 {dimension_numbers = #tpu.dot_dimension_numbers<[1], [0], [0], [1], [0, 0, 1, 1], [], []>} : vector<8x128xf32>, vector<128x128xf32>, vector<8x128xf32> -> vector<8x128xf32>
    %30 = arith.addf %28, %29 : vector<8x128xf32>
    %31 = math.tanh %30 : vector<8x128xf32>
    %32 = vector.shape_cast %31 : vector<8x128xf32> to vector<8x1x128xf32>
    %c0_19 = arith.constant 0 : index
    %c2 = arith.constant 2 : index
    %c0_20 = arith.constant 0 : index
    %33 = vector.load %arg6[%c0_19, %c2, %c0_20] : memref<8x8x128xf32, #tpu.memory_space<vmem>>, vector<8x1x128xf32>
    tpu.vector_store %arg6[%c0_19, %c2, %c0_20], %32 {strides = array<i32>} : memref<8x8x128xf32, #tpu.memory_space<vmem>>, vector<8x1x128xf32>,
    %34 = vector.extract_strided_slice %11 {offsets = [0, 3, 0], sizes = [8, 1, 128], strides = [1, 1, 1]} : vector<8x8x128xf32> to vector<8x1x128xf32>
    %35 = vector.shape_cast %34 : vector<8x1x128xf32> to vector<8x128xf32>
    %cst_21 = arith.constant dense<0.000000e+00> : vector<8x128xf32>
    %36 = tpu.matmul %31, %3, %cst_21 {dimension_numbers = #tpu.dot_dimension_numbers<[1], [0], [0], [1], [0, 0, 1, 1], [], []>} : vector<8x128xf32>, vector<128x128xf32>, vector<8x128xf32> -> vector<8x128xf32>
    %37 = arith.addf %35, %36 : vector<8x128xf32>
    %38 = math.tanh %37 : vector<8x128xf32>
    %39 = vector.shape_cast %38 : vector<8x128xf32> to vector<8x1x128xf32>
    %c0_22 = arith.constant 0 : index
    %c3 = arith.constant 3 : index
    %c0_23 = arith.constant 0 : index
    %40 = vector.load %arg6[%c0_22, %c3, %c0_23] : memref<8x8x128xf32, #tpu.memory_space<vmem>>, vector<8x1x128xf32>
    tpu.vector_store %arg6[%c0_22, %c3, %c0_23], %39 {strides = array<i32>} : memref<8x8x128xf32, #tpu.memory_space<vmem>>, vector<8x1x128xf32>,
    %41 = vector.extract_strided_slice %11 {offsets = [0, 4, 0], sizes = [8, 1, 128], strides = [1, 1, 1]} : vector<8x8x128xf32> to vector<8x1x128xf32>
    %42 = vector.shape_cast %41 : vector<8x1x128xf32> to vector<8x128xf32>
    %cst_24 = arith.constant dense<0.000000e+00> : vector<8x128xf32>
    %43 = tpu.matmul %38, %3, %cst_24 {dimension_numbers = #tpu.dot_dimension_numbers<[1], [0], [0], [1], [0, 0, 1, 1], [], []>} : vector<8x128xf32>, vector<128x128xf32>, vector<8x128xf32> -> vector<8x128xf32>
    %44 = arith.addf %42, %43 : vector<8x128xf32>
    %45 = math.tanh %44 : vector<8x128xf32>
    %46 = vector.shape_cast %45 : vector<8x128xf32> to vector<8x1x128xf32>
    %c0_25 = arith.constant 0 : index
    %c4 = arith.constant 4 : index
    %c0_26 = arith.constant 0 : index
    %47 = vector.load %arg6[%c0_25, %c4, %c0_26] : memref<8x8x128xf32, #tpu.memory_space<vmem>>, vector<8x1x128xf32>
    tpu.vector_store %arg6[%c0_25, %c4, %c0_26], %46 {strides = array<i32>} : memref<8x8x128xf32, #tpu.memory_space<vmem>>, vector<8x1x128xf32>,
    %48 = vector.extract_strided_slice %11 {offsets = [0, 5, 0], sizes = [8, 1, 128], strides = [1, 1, 1]} : vector<8x8x128xf32> to vector<8x1x128xf32>
    %49 = vector.shape_cast %48 : vector<8x1x128xf32> to vector<8x128xf32>
    %cst_27 = arith.constant dense<0.000000e+00> : vector<8x128xf32>
    %50 = tpu.matmul %45, %3, %cst_27 {dimension_numbers = #tpu.dot_dimension_numbers<[1], [0], [0], [1], [0, 0, 1, 1], [], []>} : vector<8x128xf32>, vector<128x128xf32>, vector<8x128xf32> -> vector<8x128xf32>
    %51 = arith.addf %49, %50 : vector<8x128xf32>
    %52 = math.tanh %51 : vector<8x128xf32>
    %53 = vector.shape_cast %52 : vector<8x128xf32> to vector<8x1x128xf32>
    %c0_28 = arith.constant 0 : index
    %c5 = arith.constant 5 : index
    %c0_29 = arith.constant 0 : index
    %54 = vector.load %arg6[%c0_28, %c5, %c0_29] : memref<8x8x128xf32, #tpu.memory_space<vmem>>, vector<8x1x128xf32>
    tpu.vector_store %arg6[%c0_28, %c5, %c0_29], %53 {strides = array<i32>} : memref<8x8x128xf32, #tpu.memory_space<vmem>>, vector<8x1x128xf32>,
    %55 = vector.extract_strided_slice %11 {offsets = [0, 6, 0], sizes = [8, 1, 128], strides = [1, 1, 1]} : vector<8x8x128xf32> to vector<8x1x128xf32>
    %56 = vector.shape_cast %55 : vector<8x1x128xf32> to vector<8x128xf32>
    %cst_30 = arith.constant dense<0.000000e+00> : vector<8x128xf32>
    %57 = tpu.matmul %52, %3, %cst_30 {dimension_numbers = #tpu.dot_dimension_numbers<[1], [0], [0], [1], [0, 0, 1, 1], [], []>} : vector<8x128xf32>, vector<128x128xf32>, vector<8x128xf32> -> vector<8x128xf32>
    %58 = arith.addf %56, %57 : vector<8x128xf32>
    %59 = math.tanh %58 : vector<8x128xf32>
    %60 = vector.shape_cast %59 : vector<8x128xf32> to vector<8x1x128xf32>
    %c0_31 = arith.constant 0 : index
    %c6 = arith.constant 6 : index
    %c0_32 = arith.constant 0 : index
    %61 = vector.load %arg6[%c0_31, %c6, %c0_32] : memref<8x8x128xf32, #tpu.memory_space<vmem>>, vector<8x1x128xf32>
    tpu.vector_store %arg6[%c0_31, %c6, %c0_32], %60 {strides = array<i32>} : memref<8x8x128xf32, #tpu.memory_space<vmem>>, vector<8x1x128xf32>,
    %62 = vector.extract_strided_slice %11 {offsets = [0, 7, 0], sizes = [8, 1, 128], strides = [1, 1, 1]} : vector<8x8x128xf32> to vector<8x1x128xf32>
    %63 = vector.shape_cast %62 : vector<8x1x128xf32> to vector<8x128xf32>
    %cst_33 = arith.constant dense<0.000000e+00> : vector<8x128xf32>
    %64 = tpu.matmul %59, %3, %cst_33 {dimension_numbers = #tpu.dot_dimension_numbers<[1], [0], [0], [1], [0, 0, 1, 1], [], []>} : vector<8x128xf32>, vector<128x128xf32>, vector<8x128xf32> -> vector<8x128xf32>
    %65 = arith.addf %63, %64 : vector<8x128xf32>
    %66 = math.tanh %65 : vector<8x128xf32>
    %67 = vector.shape_cast %66 : vector<8x128xf32> to vector<8x1x128xf32>
    %c0_34 = arith.constant 0 : index
    %c7 = arith.constant 7 : index
    %c0_35 = arith.constant 0 : index
    %68 = vector.load %arg6[%c0_34, %c7, %c0_35] : memref<8x8x128xf32, #tpu.memory_space<vmem>>, vector<8x1x128xf32>
    tpu.vector_store %arg6[%c0_34, %c7, %c0_35], %67 {strides = array<i32>} : memref<8x8x128xf32, #tpu.memory_space<vmem>>, vector<8x1x128xf32>,
    %c0_36 = arith.constant 0 : index
    %c0_37 = arith.constant 0 : index
    %69 = vector.load %arg8[%c0_36, %c0_37] : memref<8x128xf32, #tpu.memory_space<vmem>>, vector<8x128xf32>
    tpu.vector_store %arg8[%c0_36, %c0_37], %66 {strides = array<i32>} : memref<8x128xf32, #tpu.memory_space<vmem>>, vector<8x128xf32>,
    %c0_i32_38 = arith.constant 0 : i32
    %70 = arith.cmpi eq, %arg1, %c0_i32_38 : i32
    %71 = arith.extui %70 : i1 to i32
    %c0_i32_39 = arith.constant 0 : i32
    %72 = arith.cmpi ne, %71, %c0_i32_39 : i32
    scf.if %72 {
      %c0_40 = arith.constant 0 : index
      %c0_41 = arith.constant 0 : index
      %73 = vector.load %arg7[%c0_40, %c0_41] : memref<8x128xf32, #tpu.memory_space<vmem>>, vector<8x128xf32>
      tpu.vector_store %arg7[%c0_40, %c0_41], %66 {strides = array<i32>} : memref<8x128xf32, #tpu.memory_space<vmem>>, vector<8x128xf32>,
    } else {
    }
    return
  }
  func.func @transform_0(%arg0: i32, %arg1: i32) -> (i32, i32, i32) {
    %c0_i32 = arith.constant 0 : i32
    %c0_i32_0 = arith.constant 0 : i32
    return %arg0, %arg1, %c0_i32 : i32, i32, i32
  }
  func.func @transform_1(%arg0: i32, %arg1: i32) -> (i32, i32) {
    %c0_i32 = arith.constant 0 : i32
    %c0_i32_0 = arith.constant 0 : i32
    %c0_i32_1 = arith.constant 0 : i32
    return %c0_i32, %c0_i32_0 : i32, i32
  }
  func.func @transform_2(%arg0: i32, %arg1: i32) -> (i32, i32) {
    %c0_i32 = arith.constant 0 : i32
    %c0_i32_0 = arith.constant 0 : i32
    %c0_i32_1 = arith.constant 0 : i32
    return %c0_i32, %c0_i32_0 : i32, i32
  }
  func.func @transform_3(%arg0: i32, %arg1: i32) -> (i32, i32) {
    %c0_i32 = arith.constant 0 : i32
    %c0_i32_0 = arith.constant 0 : i32
    %c0_i32_1 = arith.constant 0 : i32
    return %c0_i32, %c0_i32_0 : i32, i32
  }
  func.func @transform_4(%arg0: i32, %arg1: i32) -> (i32, i32, i32) {
    %c0_i32 = arith.constant 0 : i32
    %c0_i32_0 = arith.constant 0 : i32
    return %arg0, %arg1, %c0_i32 : i32, i32, i32
  }
  func.func @transform_5(%arg0: i32, %arg1: i32) -> (i32, i32) {
    %c0_i32 = arith.constant 0 : i32
    %c0_i32_0 = arith.constant 0 : i32
    return %arg0, %c0_i32 : i32, i32
  }
}

</mosaic_0001>

<bundles_post_ra>
// kernel: mul.2
= control target key start
LH: loop header
LB: loop body
LE: loop exit
PB: predicated region body
PF: predicated region fallthrough
CT: control target
= control target key end

     0   :  { %3 = vsyncpa [#allocation1], 0  ;;  %s138_s0 = inlined_call_operand.hbm [shape: f32[16,32], index: 0, kind: input, shape index: {}]   ;;  %s139_s1 = inlined_call_operand.hbm [shape: f32[16,32], index: 1, kind: input, shape index: {}]   ;;  %s140_s2 = inlined_call_operand.vmem [shape: f32[16,32], index: 2, kind: output, shape index: {}]  }
   0x1   :  { %s7_s0 = sshll.u32 %s138_s0, 4  ;;  %s8_s0 = int_to_ptr.hbm [resolvable:$true] %s7_s0 }
   0x2   :  { %4 = vsyncpa [#allocation3], 0  ;;  %s107_s11 = smov [#allocation0]   ;;  %s18_s1 = sshll.u32 %s139_s1, 4  ;;  %s19_s1 = int_to_ptr.hbm [resolvable:$true] %s18_s1 }
   0x3   :  { %s9_s12 = sshll.u32 %s107_s11, 4  ;;  %s108_s15 = smov 128   ;;  %s10_s12 = int_to_ptr.vmem [resolvable:$true] %s9_s12 }
   0x4   :  { %s109_s16 = smov 8   ;;  %s110_s17 = smov [#allocation2]  }
   0x5   :  { %15 = dma.hbm_to_vmem [thread:$0]  %s8_s0, 256, %s10_s12, [#allocation1], %s108_s15, %s108_s15, %s109_s16  }
   0x6   :  { %s20_s18 = sshll.u32 %s110_s17, 4  ;;  %s21_s18 = int_to_ptr.vmem [resolvable:$true] %s20_s18 }
   0x7   :  { %26 = dma.hbm_to_vmem [thread:$0]  %s19_s1, 256, %s21_s18, [#allocation3], %s108_s15, %s108_s15, %s109_s16  }
   0x8   :  { %103 = dma.done.wait [#allocation1], 256  }
   0x9   :  { %104 = vsyncadd [#allocation1], 4294967040 }
   0xa   :  { %105 = dma.done.wait [#allocation3], 256  }
   0xb   :  { %106 = vsyncadd [#allocation3], 4294967040  ;;  %v31_v0 = vld [vmem:[#allocation0] sm:$0xff]  ;;  %v32_v1 = vld [vmem:[#allocation2] sm:$0xff] }
   0xc   :  { %v39_v2 = vld [vmem:[#allocation0 + $0x8] sm:$0xff]  ;;  %v35_v3 = vmul.f32 %v32_v1, %v31_v0  ;;  %v41_v4 = vld [vmem:[#allocation2 + $0x8] sm:$0xff] }
   0xd   :  { %v44_v5 = vmul.f32 %v41_v4, %v39_v2 }
   0xe   :  { %37 = vst [vmem:[%s140_s2] sm:$0xff] %v35_v3 }
   0xf   :  { %50 = vst [vmem:[%s140_s2 + $0x8] sm:$0xff] %v44_v5 }
  0x10   :  { %48 = vsyncpa [#allocation1], 1 }
  0x11   :  { %49 = vsyncpa [#allocation3], 1 }

// kernel: mul.3
= control target key start
LH: loop header
LB: loop body
LE: loop exit
PB: predicated region body
PF: predicated region fallthrough
CT: control target
= control target key end

     0   :  { %3 = vsyncpa [#allocation1], 0  ;;  %s90_s11 = smov [#allocation0]   ;;  %s91_s13 = smov 128   ;;  %s135_s0 = inlined_call_operand.vmem [shape: f32[32,32], index: 0, kind: input, shape index: {}]   ;;  %s136_s1 = inlined_call_operand.hbm [shape: f32[32,32], index: 1, kind: input, shape index: {}]   ;;  %s137_s2 = inlined_call_operand.vmem [shape: f32[32,32], index: 2, kind: output, shape index: {}]  }
   0x1   :  { %s6_s1 = sshll.u32 %s136_s1, 4  ;;  %s8_s12 = sshll.u32 %s90_s11, 4  ;;  %s7_s1 = int_to_ptr.hbm [resolvable:$true] %s6_s1  ;;  %s9_s12 = int_to_ptr.vmem [resolvable:$true] %s8_s12 }
   0x2   :  { %s92_s14 = smov 8  }
   0x3   :  { %14 = dma.hbm_to_vmem [thread:$0]  %s7_s1, 512, %s9_s12, [#allocation1], %s91_s13, %s91_s13, %s92_s14  }
   0x4   :  { %88 = dma.done.wait [#allocation1], 512  }
   0x5   :  { %89 = vsyncadd [#allocation1], 4294966784  ;;  %v17_v0 = vld [vmem:[%s135_s0] sm:$0xff]  ;;  %v55_v2 = vld [vmem:[%s135_s0 + $0x8] sm:$0xff] }
   0x6   :  { %v18_v1 = vld [vmem:[#allocation0] sm:$0xff]  ;;  %v27_v4 = vld [vmem:[#allocation0 + $0x8] sm:$0xff]  ;;  %v57_v5 = vld [vmem:[%s135_s0 + $0x10] sm:$0xff] }
   0x7   :  { %v21_v3 = vmul.f32 %v18_v1, %v17_v0  ;;  %v37_v6 = vld [vmem:[#allocation0 + $0x10] sm:$0xff]  ;;  %v30_v7 = vmul.f32 %v55_v2, %v27_v4  ;;  %v59_v9 = vld [vmem:[%s135_s0 + $0x18] sm:$0xff] }
   0x8   :  { %v40_v8 = vmul.f32 %v57_v5, %v37_v6  ;;  %v47_v10 = vld [vmem:[#allocation0 + $0x18] sm:$0xff] }
   0x9   :  { %23 = vst [vmem:[%s137_s2] sm:$0xff] %v21_v3  ;;  %v50_v11 = vmul.f32 %v59_v9, %v47_v10 }
   0xa   :  { %56 = vst [vmem:[%s137_s2 + $0x8] sm:$0xff] %v30_v7 }
   0xb   :  { %58 = vst [vmem:[%s137_s2 + $0x10] sm:$0xff] %v40_v8 }
   0xc   :  { %60 = vst [vmem:[%s137_s2 + $0x18] sm:$0xff] %v50_v11 }
   0xd   :  { %54 = vsyncpa [#allocation1], 1 }

// kernel: masked_neural_rnn.1
= control target key start
LH: loop header
LB: loop body
LE: loop exit
PB: predicated region body
PF: predicated region fallthrough
CT: control target
= control target key end

     0   :  { %v926_v33 = vmov 0.0   ;;  %vm179_vm0 = vcmask 1041409   ;;  %vm182_vm1 = vcmask 1042434   ;;  %vm185_vm2 = vcmask 1043459   ;;  %s1573_s1 = inlined_call_operand.vmem [shape: f32[128,128], index: 1, kind: input, shape index: {}]   ;;  %s1574_s2 = inlined_call_operand.vmem [shape: f32[128,128], index: 2, kind: input, shape index: {}]   ;;  %s1575_s3 = inlined_call_operand.vmem [shape: f32[1,128], index: 3, kind: input, shape index: {}]   ;;  %s1576_s0 = inlined_call_operand.vmem [shape: f32[8,8,128], index: 0, kind: input, shape index: {}]   ;;  %s1577_s4 = inlined_call_operand.vmem [shape: f32[8,8,128], index: 4, kind: output, shape index: {0}]   ;;  %s1578_s5 = inlined_call_operand.vmem [shape: f32[8,128], index: 5, kind: output, shape index: {1}]  }
   0x1   :  { %v55_v0 = vld [vmem:[%s1573_s1 + $0x78] sm:$0xff]  ;;  %v54_v1 = vld [vmem:[%s1573_s1 + $0x70] sm:$0xff]  ;;  %v53_v4 = vld [vmem:[%s1573_s1 + $0x68] sm:$0xff]  ;;  %vm188_vm3 = vcmask 1044484   ;;  %vm191_vm4 = vcmask 1045509   ;;  %vm194_vm5 = vcmask 1046534  }
   0x2   :  { %v966_v2 = vld [vmem:[%s1574_s2 + $0x78] sm:$0xff]  ;;  %68 = vmatpush.msra.mxu0 %v55_v0  ;;  %v972_v3 = vld [vmem:[%s1574_s2 + $0x70] sm:$0xff]  ;;  %v980_v5 = vld [vmem:[%s1574_s2 + $0x68] sm:$0xff]  ;;  %vm197_vm6 = vcmask 1047559  }
   0x3   :  { %110 = vmatpush.msra.mxu1 %v966_v2  ;;  %200 = vmatpush.msra.mxu2 %v966_v2  ;;  %v52_v6 = vld [vmem:[%s1573_s1 + $0x60] sm:$0xff]  ;;  %v51_v8 = vld [vmem:[%s1573_s1 + $0x58] sm:$0xff]  ;;  %v50_v10 = vld [vmem:[%s1573_s1 + $0x50] sm:$0xff] }
   0x4   :  { %283 = vmatpush.msra.mxu3 %v966_v2  ;;  %69 = vmatpush.msra.mxu0 %v54_v1  ;;  %v991_v7 = vld [vmem:[%s1574_s2 + $0x60] sm:$0xff]  ;;  %v1002_v9 = vld [vmem:[%s1574_s2 + $0x58] sm:$0xff]  ;;  %v1013_v11 = vld [vmem:[%s1574_s2 + $0x50] sm:$0xff] }
   0x5   :  { %111 = vmatpush.msra.mxu1 %v972_v3  ;;  %201 = vmatpush.msra.mxu2 %v972_v3  ;;  %v49_v12 = vld [vmem:[%s1573_s1 + $0x48] sm:$0xff]  ;;  %v48_v14 = vld [vmem:[%s1573_s1 + $0x40] sm:$0xff]  ;;  %v47_v16 = vld [vmem:[%s1573_s1 + $0x38] sm:$0xff] }
   0x6   :  { %284 = vmatpush.msra.mxu3 %v972_v3  ;;  %70 = vmatpush.msra.mxu0 %v53_v4  ;;  %v1024_v13 = vld [vmem:[%s1574_s2 + $0x48] sm:$0xff]  ;;  %v1035_v15 = vld [vmem:[%s1574_s2 + $0x40] sm:$0xff]  ;;  %v1046_v17 = vld [vmem:[%s1574_s2 + $0x38] sm:$0xff] }
   0x7   :  { %112 = vmatpush.msra.mxu1 %v980_v5  ;;  %202 = vmatpush.msra.mxu2 %v980_v5  ;;  %v46_v18 = vld [vmem:[%s1573_s1 + $0x30] sm:$0xff]  ;;  %v45_v20 = vld [vmem:[%s1573_s1 + $0x28] sm:$0xff]  ;;  %v44_v22 = vld [vmem:[%s1573_s1 + $0x20] sm:$0xff] }
   0x8   :  { %285 = vmatpush.msra.mxu3 %v980_v5  ;;  %71 = vmatpush.msra.mxu0 %v52_v6  ;;  %v1057_v19 = vld [vmem:[%s1574_s2 + $0x30] sm:$0xff]  ;;  %v1068_v21 = vld [vmem:[%s1574_s2 + $0x28] sm:$0xff]  ;;  %v1079_v23 = vld [vmem:[%s1574_s2 + $0x20] sm:$0xff] }
   0x9   :  { %113 = vmatpush.msra.mxu1 %v991_v7  ;;  %203 = vmatpush.msra.mxu2 %v991_v7  ;;  %v43_v24 = vld [vmem:[%s1573_s1 + $0x18] sm:$0xff]  ;;  %v42_v26 = vld [vmem:[%s1573_s1 + $0x10] sm:$0xff]  ;;  %v41_v28 = vld [vmem:[%s1573_s1 + $0x8] sm:$0xff] }
   0xa   :  { %286 = vmatpush.msra.mxu3 %v991_v7  ;;  %72 = vmatpush.msra.mxu0 %v51_v8  ;;  %v1090_v25 = vld [vmem:[%s1574_s2 + $0x18] sm:$0xff]  ;;  %v1101_v27 = vld [vmem:[%s1574_s2 + $0x10] sm:$0xff]  ;;  %v1112_v29 = vld [vmem:[%s1574_s2 + $0x8] sm:$0xff] }
   0xb   :  { %114 = vmatpush.msra.mxu1 %v1002_v9  ;;  %204 = vmatpush.msra.mxu2 %v1002_v9  ;;  %v40_v30 = vld [vmem:[%s1573_s1] sm:$0xff]  ;;  %v58_v34 = vld [vmem:[%s1576_s0 + $0x8] sm:$0xff]  ;;  %v59_v35 = vld [vmem:[%s1576_s0 + $0x10] sm:$0xff] }
   0xc   :  { %287 = vmatpush.msra.mxu3 %v1002_v9  ;;  %73 = vmatpush.msra.mxu0 %v50_v10  ;;  %v1123_v31 = vld [vmem:[%s1574_s2] sm:$0xff]  ;;  %v60_v36 = vld [vmem:[%s1576_s0 + $0x18] sm:$0xff]  ;;  %v62_v38 = vld [vmem:[%s1576_s0 + $0x28] sm:$0xff] }
   0xd   :  { %115 = vmatpush.msra.mxu1 %v1013_v11  ;;  %205 = vmatpush.msra.mxu2 %v1013_v11  ;;  %v57_v32 = vld [vmem:[%s1576_s0] sm:$0xff]  ;;  %v63_v39 = vld [vmem:[%s1576_s0 + $0x30] sm:$0xff]  ;;  %v64_v40 = vld [vmem:[%s1576_s0 + $0x38] sm:$0xff] }
   0xe   :  { %288 = vmatpush.msra.mxu3 %v1013_v11  ;;  %74 = vmatpush.msra.mxu0 %v49_v12  ;;  %v61_v37 = vld [vmem:[%s1576_s0 + $0x20] sm:$0xff] }
   0xf   :  { %116 = vmatpush.msra.mxu1 %v1024_v13  ;;  %206 = vmatpush.msra.mxu2 %v1024_v13  ;;  %v797_v41 = vld [vmem:[%s1575_s3] ss:$0 sm:$0xff] }
  0x10   :  { %289 = vmatpush.msra.mxu3 %v1024_v13  ;;  %75 = vmatpush.msra.mxu0 %v48_v14 }
  0x11   :  { %117 = vmatpush.msra.mxu1 %v1035_v15  ;;  %207 = vmatpush.msra.mxu2 %v1035_v15 }
  0x12   :  { %290 = vmatpush.msra.mxu3 %v1035_v15  ;;  %76 = vmatpush.msra.mxu0 %v47_v16 }
  0x13   :  { %118 = vmatpush.msra.mxu1 %v1046_v17  ;;  %208 = vmatpush.msra.mxu2 %v1046_v17 }
  0x14   :  { %291 = vmatpush.msra.mxu3 %v1046_v17  ;;  %77 = vmatpush.msra.mxu0 %v46_v18 }
  0x15   :  { %119 = vmatpush.msra.mxu1 %v1057_v19  ;;  %209 = vmatpush.msra.mxu2 %v1057_v19 }
  0x16   :  { %292 = vmatpush.msra.mxu3 %v1057_v19  ;;  %78 = vmatpush.msra.mxu0 %v45_v20 }
  0x17   :  { %120 = vmatpush.msra.mxu1 %v1068_v21  ;;  %210 = vmatpush.msra.mxu2 %v1068_v21 }
  0x18   :  { %293 = vmatpush.msra.mxu3 %v1068_v21  ;;  %79 = vmatpush.msra.mxu0 %v44_v22 }
  0x19   :  { %121 = vmatpush.msra.mxu1 %v1079_v23  ;;  %211 = vmatpush.msra.mxu2 %v1079_v23 }
  0x1a   :  { %294 = vmatpush.msra.mxu3 %v1079_v23  ;;  %80 = vmatpush.msra.mxu0 %v43_v24 }
  0x1b   :  { %122 = vmatpush.msra.mxu1 %v1090_v25  ;;  %212 = vmatpush.msra.mxu2 %v1090_v25 }
  0x1c   :  { %295 = vmatpush.msra.mxu3 %v1090_v25  ;;  %81 = vmatpush.msra.mxu0 %v42_v26 }
  0x1d   :  { %123 = vmatpush.msra.mxu1 %v1101_v27  ;;  %213 = vmatpush.msra.mxu2 %v1101_v27 }
  0x1e   :  { %296 = vmatpush.msra.mxu3 %v1101_v27  ;;  %82 = vmatpush.msra.mxu0 %v41_v28 }
  0x1f   :  { %124 = vmatpush.msra.mxu1 %v1112_v29  ;;  %214 = vmatpush.msra.mxu2 %v1112_v29 }
  0x20   :  { %297 = vmatpush.msra.mxu3 %v1112_v29  ;;  %83 = vmatpush.msra.mxu0 %v40_v30 }
  0x21   :  { %125 = vmatpush.msra.mxu1 %v1123_v31  ;;  %84 = vmatmul.f32.vlgmr.msra.gmra.mxu0 %v57_v32 }
  0x22   :  { %126 = vmatmul.f32.vlgmr.msra.gmra.mxu1 %v926_v33  ;;  %215 = vmatpush.msra.mxu2 %v1123_v31 }
  0x23   :  { %298 = vmatpush.msra.mxu3 %v1123_v31  ;;  %366 = vmatpush.msrb.mxu1 %v966_v2 }
  0x24   :  { %449 = vmatpush.msrb.mxu2 %v966_v2  ;;  %615 = vmatpush.msrb.mxu0 %v966_v2 }
  0x25   :  { %532 = vmatpush.msrb.mxu3 %v966_v2  ;;  %367 = vmatpush.msrb.mxu1 %v972_v3 }
  0x26   :  { %450 = vmatpush.msrb.mxu2 %v972_v3  ;;  %616 = vmatpush.msrb.mxu0 %v972_v3 }
  0x27   :  { %533 = vmatpush.msrb.mxu3 %v972_v3  ;;  %368 = vmatpush.msrb.mxu1 %v980_v5 }
  0x28   :  { %451 = vmatpush.msrb.mxu2 %v980_v5  ;;  %617 = vmatpush.msrb.mxu0 %v980_v5 }
  0x29   :  { %534 = vmatpush.msrb.mxu3 %v980_v5  ;;  %87 = vmatmul.f32.gmra.mxu0 %v58_v34 }
  0x2a   :  { %369 = vmatpush.msrb.mxu1 %v991_v7  ;;  %452 = vmatpush.msrb.mxu2 %v991_v7 }
  0x2b   :  { %535 = vmatpush.msrb.mxu3 %v991_v7  ;;  %618 = vmatpush.msrb.mxu0 %v991_v7 }
  0x2c   :  { %370 = vmatpush.msrb.mxu1 %v1002_v9  ;;  %453 = vmatpush.msrb.mxu2 %v1002_v9 }
  0x2d   :  { %536 = vmatpush.msrb.mxu3 %v1002_v9  ;;  %619 = vmatpush.msrb.mxu0 %v1002_v9 }
  0x2e   :  { %371 = vmatpush.msrb.mxu1 %v1013_v11  ;;  %454 = vmatpush.msrb.mxu2 %v1013_v11 }
  0x2f   :  { %537 = vmatpush.msrb.mxu3 %v1013_v11  ;;  %620 = vmatpush.msrb.mxu0 %v1013_v11 }
  0x30   :  { %372 = vmatpush.msrb.mxu1 %v1024_v13  ;;  %455 = vmatpush.msrb.mxu2 %v1024_v13 }
  0x31   :  { %538 = vmatpush.msrb.mxu3 %v1024_v13  ;;  %90 = vmatmul.f32.gmra.mxu0 %v59_v35 }
  0x32   :  { %373 = vmatpush.msrb.mxu1 %v1035_v15  ;;  %456 = vmatpush.msrb.mxu2 %v1035_v15 }
  0x33   :  { %539 = vmatpush.msrb.mxu3 %v1035_v15  ;;  %621 = vmatpush.msrb.mxu0 %v1024_v13 }
  0x34   :  { %374 = vmatpush.msrb.mxu1 %v1046_v17  ;;  %457 = vmatpush.msrb.mxu2 %v1046_v17 }
  0x35   :  { %540 = vmatpush.msrb.mxu3 %v1046_v17  ;;  %622 = vmatpush.msrb.mxu0 %v1035_v15 }
  0x36   :  { %375 = vmatpush.msrb.mxu1 %v1057_v19  ;;  %458 = vmatpush.msrb.mxu2 %v1057_v19 }
  0x37   :  { %541 = vmatpush.msrb.mxu3 %v1057_v19  ;;  %623 = vmatpush.msrb.mxu0 %v1046_v17 }
  0x38   :  { %376 = vmatpush.msrb.mxu1 %v1068_v21  ;;  %459 = vmatpush.msrb.mxu2 %v1068_v21 }
  0x39   :  { %542 = vmatpush.msrb.mxu3 %v1068_v21  ;;  %93 = vmatmul.f32.gmra.mxu0 %v60_v36 }
  0x3a   :  { %377 = vmatpush.msrb.mxu1 %v1079_v23  ;;  %460 = vmatpush.msrb.mxu2 %v1079_v23 }
  0x3b   :  { %543 = vmatpush.msrb.mxu3 %v1079_v23  ;;  %624 = vmatpush.msrb.mxu0 %v1057_v19 }
  0x3c   :  { %378 = vmatpush.msrb.mxu1 %v1090_v25  ;;  %461 = vmatpush.msrb.mxu2 %v1090_v25 }
  0x3d   :  { %544 = vmatpush.msrb.mxu3 %v1090_v25  ;;  %625 = vmatpush.msrb.mxu0 %v1068_v21 }
  0x3e   :  { %379 = vmatpush.msrb.mxu1 %v1101_v27  ;;  %462 = vmatpush.msrb.mxu2 %v1101_v27 }
  0x3f   :  { %545 = vmatpush.msrb.mxu3 %v1101_v27  ;;  %626 = vmatpush.msrb.mxu0 %v1079_v23 }
  0x40   :  { %380 = vmatpush.msrb.mxu1 %v1112_v29  ;;  %463 = vmatpush.msrb.mxu2 %v1112_v29 }
  0x41   :  { %546 = vmatpush.msrb.mxu3 %v1112_v29  ;;  %96 = vmatmul.f32.gmra.mxu0 %v61_v37 }
  0x42   :  { %381 = vmatpush.msrb.mxu1 %v1123_v31  ;;  %464 = vmatpush.msrb.mxu2 %v1123_v31 }
  0x43   :  { %547 = vmatpush.msrb.mxu3 %v1123_v31  ;;  %627 = vmatpush.msrb.mxu0 %v1090_v25 }
  0x44   :  { %698 = vmatpush.msra.mxu1 %v966_v2 }
  0x45   :  { %628 = vmatpush.msrb.mxu0 %v1101_v27 }
  0x46   :  { %699 = vmatpush.msra.mxu1 %v972_v3 }
  0x47   :  { %629 = vmatpush.msrb.mxu0 %v1112_v29 }
  0x48   :  { %700 = vmatpush.msra.mxu1 %v980_v5 }
  0x49   :  { %99 = vmatmul.f32.gmra.mxu0 %v62_v38 }
  0x4a   :  { %701 = vmatpush.msra.mxu1 %v991_v7  ;;  %630 = vmatpush.msrb.mxu0 %v1123_v31 }
  0x4c   :  { %702 = vmatpush.msra.mxu1 %v1002_v9 }
  0x4e   :  { %703 = vmatpush.msra.mxu1 %v1013_v11 }
  0x50   :  { %704 = vmatpush.msra.mxu1 %v1024_v13 }
  0x51   :  { %102 = vmatmul.f32.gmra.mxu0 %v63_v39 }
  0x52   :  { %705 = vmatpush.msra.mxu1 %v1035_v15 }
  0x54   :  { %706 = vmatpush.msra.mxu1 %v1046_v17 }
  0x56   :  { %707 = vmatpush.msra.mxu1 %v1057_v19 }
  0x58   :  { %708 = vmatpush.msra.mxu1 %v1068_v21 }
  0x59   :  { %105 = vmatmul.f32.gmra.mxu0 %v64_v40 }
  0x5a   :  { %709 = vmatpush.msra.mxu1 %v1079_v23 }
  0x5c   :  { %710 = vmatpush.msra.mxu1 %v1090_v25 }
  0x5e   :  { %711 = vmatpush.msra.mxu1 %v1101_v27 }
  0x60   :  { %712 = vmatpush.msra.mxu1 %v1112_v29 }
  0x62   :  { %713 = vmatpush.msra.mxu1 %v1123_v31 }
  0x9e   :  { %v85_v42 = vpop.f32.mrf.mxu0 }
  0x9f   :  { %v127_v43 = vpop.f32.mrf.mxu1  ;;  %v1240_v44 = vadd.f32 %v797_v41, %v85_v42 }
  0xa0   :  { %v131_v46 = vrot.slane %v127_v43, 1  ;;  %v132_v51 = vrot.slane %v127_v43, 2  ;;  %v133_v56 = vrot.slane %v127_v43, 3  ;;  %v134_v61 = vrot.slane %v127_v43, 4 }
  0xa1   :  { %v146_v45 = vadd.f32 %v127_v43, %v1240_v44  ;;  %v135_v2 = vrot.slane %v127_v43, 5  ;;  %v136_v7 = vrot.slane %v127_v43, 6  ;;  %v137_v14 = vrot.slane %v127_v43, 7 }
  0xa3   :  { %798 = vtanh.f32 %v146_v45 }
  0xa6   :  { %v88_v47 = vpop.f32.mrf.mxu0 }
  0xa7   :  { %v1243_v48 = vadd.f32 %v797_v41, %v88_v47 }
  0xa9   :  { %v799_v49 = vpop.eup %798  ;;  %v147_v50 = vadd.f32 %v131_v46, %v1243_v48 }
  0xaa   :  { %162 = vst [vmem:[%s1577_s4] sm:$0x1] %v799_v49 }
  0xab   :  { %800 = vtanh.f32 %v147_v50 }
  0xae   :  { %v91_v52 = vpop.f32.mrf.mxu0 }
  0xaf   :  { %v1249_v53 = vadd.f32 %v797_v41, %v91_v52 }
  0xb1   :  { %v801_v54 = vpop.eup %800  ;;  %v148_v55 = vadd.f32 %v132_v51, %v1249_v53 }
  0xb2   :  { %163 = vst [vmem:[%s1577_s4 + $0x8] sm:$0x1] %v801_v54  ;;  %v178_v17 = vrot.slane %v801_v54, 7 }
  0xb3   :  { %802 = vtanh.f32 %v148_v55 }
  0xb4   :  { %v180_v21 = vsel %vm179_vm0, %v178_v17, %v799_v49 }
  0xb6   :  { %v94_v57 = vpop.f32.mrf.mxu0 }
  0xb7   :  { %v1255_v58 = vadd.f32 %v797_v41, %v94_v57 }
  0xb9   :  { %v803_v59 = vpop.eup %802  ;;  %v149_v60 = vadd.f32 %v133_v56, %v1255_v58 }
  0xba   :  { %164 = vst [vmem:[%s1577_s4 + $0x10] sm:$0x1] %v803_v59  ;;  %v181_v18 = vrot.slane %v803_v59, 6 }
  0xbb   :  { %804 = vtanh.f32 %v149_v60 }
  0xbc   :  { %v183_v23 = vsel %vm182_vm1, %v181_v18, %v180_v21 }
  0xbe   :  { %v97_v62 = vpop.f32.mrf.mxu0 }
  0xbf   :  { %v1261_v63 = vadd.f32 %v797_v41, %v97_v62 }
  0xc1   :  { %v805_v0 = vpop.eup %804  ;;  %v150_v1 = vadd.f32 %v134_v61, %v1261_v63 }
  0xc2   :  { %165 = vst [vmem:[%s1577_s4 + $0x18] sm:$0x1] %v805_v0  ;;  %v184_v19 = vrot.slane %v805_v0, 5 }
  0xc3   :  { %806 = vtanh.f32 %v150_v1 }
  0xc4   :  { %v186_v25 = vsel %vm185_vm2, %v184_v19, %v183_v23 }
  0xc6   :  { %v100_v3 = vpop.f32.mrf.mxu0 }
  0xc7   :  { %v1267_v4 = vadd.f32 %v797_v41, %v100_v3 }
  0xc9   :  { %v807_v5 = vpop.eup %806  ;;  %v151_v6 = vadd.f32 %v135_v2, %v1267_v4 }
  0xca   :  { %166 = vst [vmem:[%s1577_s4 + $0x20] sm:$0x1] %v807_v5  ;;  %v187_v20 = vrot.slane %v807_v5, 4 }
  0xcb   :  { %808 = vtanh.f32 %v151_v6 }
  0xcc   :  { %v189_v27 = vsel %vm188_vm3, %v187_v20, %v186_v25 }
  0xce   :  { %v103_v8 = vpop.f32.mrf.mxu0 }
  0xcf   :  { %v1273_v9 = vadd.f32 %v797_v41, %v103_v8 }
  0xd1   :  { %v809_v10 = vpop.eup %808  ;;  %v152_v11 = vadd.f32 %v136_v7, %v1273_v9 }
  0xd2   :  { %167 = vst [vmem:[%s1577_s4 + $0x28] sm:$0x1] %v809_v10  ;;  %v190_v22 = vrot.slane %v809_v10, 3 }
  0xd3   :  { %810 = vtanh.f32 %v152_v11 }
  0xd4   :  { %v192_v28 = vsel %vm191_vm4, %v190_v22, %v189_v27 }
  0xd6   :  { %v106_v12 = vpop.f32.mrf.mxu0 }
  0xd7   :  { %v1279_v13 = vadd.f32 %v797_v41, %v106_v12 }
  0xd9   :  { %v811_v15 = vpop.eup %810  ;;  %v153_v16 = vadd.f32 %v137_v14, %v1279_v13 }
  0xda   :  { %168 = vst [vmem:[%s1577_s4 + $0x30] sm:$0x1] %v811_v15  ;;  %v193_v24 = vrot.slane %v811_v15, 2 }
  0xdb   :  { %812 = vtanh.f32 %v153_v16 }
  0xdc   :  { %v195_v30 = vsel %vm194_vm5, %v193_v24, %v192_v28 }
  0xe1   :  { %v813_v26 = vpop.eup %812 }
  0xe2   :  { %169 = vst [vmem:[%s1577_s4 + $0x38] sm:$0x1] %v813_v26  ;;  %v196_v29 = vrot.slane %v813_v26, 1 }
  0xe4   :  { %v198_v31 = vsel %vm197_vm6, %v196_v29, %v195_v30 }
  0xe5   :  { %216 = vmatmul.f32.vlgmr.msra.gmra.mxu2 %v198_v31 }
 0x168   :  { %v217_v32 = vpop.f32.mrf.mxu2 }
 0x169   :  { %v221_v33 = vrot.slane %v217_v32, 7  ;;  %v222_v34 = vrot.slane %v217_v32, 1  ;;  %v223_v35 = vrot.slane %v217_v32, 2  ;;  %v224_v36 = vrot.slane %v217_v32, 3 }
 0x16a   :  { %v237_v37 = vadd.f32 %v217_v32, %v1243_v48  ;;  %v225_v38 = vrot.slane %v217_v32, 4  ;;  %v226_v39 = vrot.slane %v217_v32, 5  ;;  %v227_v42 = vrot.slane %v217_v32, 6 }
 0x16b   :  { %v236_v40 = vadd.f32 %v221_v33, %v1240_v44  ;;  %v238_v41 = vadd.f32 %v222_v34, %v1249_v53  ;;  %v239_v43 = vadd.f32 %v223_v35, %v1255_v58  ;;  %v240_v45 = vadd.f32 %v224_v36, %v1261_v63 }
 0x16c   :  { %814 = vtanh.f32 %v237_v37  ;;  %v241_v46 = vadd.f32 %v225_v38, %v1267_v4  ;;  %v242_v47 = vadd.f32 %v226_v39, %v1273_v9  ;;  %v243_v49 = vadd.f32 %v227_v42, %v1279_v13 }
 0x16d   :  { %816 = vtanh.f32 %v236_v40 }
 0x16e   :  { %818 = vtanh.f32 %v238_v41 }
 0x16f   :  { %820 = vtanh.f32 %v239_v43 }
 0x170   :  { %822 = vtanh.f32 %v240_v45 }
 0x171   :  { %824 = vtanh.f32 %v241_v46 }
 0x172   :  { %v815_v50 = vpop.eup %814  ;;  %826 = vtanh.f32 %v242_v47 }
 0x173   :  { %v817_v51 = vpop.eup %816  ;;  %253 = vst [vmem:[%s1577_s4 + $0x8] sm:$0x2] %v815_v50  ;;  %828 = vtanh.f32 %v243_v49 }
 0x174   :  { %v819_v52 = vpop.eup %818  ;;  %252 = vst [vmem:[%s1577_s4] sm:$0x2] %v817_v51  ;;  %v268_v54 = vrot.slane %v817_v51, 1 }
 0x175   :  { %v821_v55 = vpop.eup %820  ;;  %254 = vst [vmem:[%s1577_s4 + $0x10] sm:$0x2] %v819_v52  ;;  %v270_v56 = vrot.slane %v819_v52, 7 }
 0x176   :  { %v823_v57 = vpop.eup %822  ;;  %255 = vst [vmem:[%s1577_s4 + $0x18] sm:$0x2] %v821_v55  ;;  %v269_v59 = vsel %vm179_vm0, %v815_v50, %v268_v54  ;;  %v272_v60 = vrot.slane %v821_v55, 6 }
 0x177   :  { %v825_v61 = vpop.eup %824  ;;  %256 = vst [vmem:[%s1577_s4 + $0x20] sm:$0x2] %v823_v57  ;;  %v271_v62 = vsel %vm182_vm1, %v270_v56, %v269_v59  ;;  %v274_v0 = vrot.slane %v823_v57, 5 }
 0x178   :  { %v827_v1 = vpop.eup %826  ;;  %257 = vst [vmem:[%s1577_s4 + $0x28] sm:$0x2] %v825_v61  ;;  %v273_v2 = vsel %vm185_vm2, %v272_v60, %v271_v62  ;;  %v276_v3 = vrot.slane %v825_v61, 4 }
 0x179   :  { %v829_v5 = vpop.eup %828  ;;  %258 = vst [vmem:[%s1577_s4 + $0x30] sm:$0x2] %v827_v1  ;;  %v275_v6 = vsel %vm188_vm3, %v274_v0, %v273_v2  ;;  %v278_v7 = vrot.slane %v827_v1, 3 }
 0x17a   :  { %259 = vst [vmem:[%s1577_s4 + $0x38] sm:$0x2] %v829_v5  ;;  %v277_v8 = vsel %vm191_vm4, %v276_v3, %v275_v6  ;;  %v280_v10 = vrot.slane %v829_v5, 2 }
 0x17b   :  { %v279_v11 = vsel %vm194_vm5, %v278_v7, %v277_v8 }
 0x17c   :  { %v281_v12 = vsel %vm197_vm6, %v280_v10, %v279_v11 }
 0x17d   :  { %299 = vmatmul.f32.vlgmr.msra.gmra.mxu3 %v281_v12 }
 0x200   :  { %v300_v14 = vpop.f32.mrf.mxu3 }
 0x201   :  { %v304_v15 = vrot.slane %v300_v14, 6  ;;  %v305_v16 = vrot.slane %v300_v14, 7  ;;  %v306_v17 = vrot.slane %v300_v14, 1  ;;  %v307_v18 = vrot.slane %v300_v14, 2 }
 0x202   :  { %v308_v19 = vrot.slane %v300_v14, 3  ;;  %v321_v20 = vadd.f32 %v300_v14, %v1249_v53  ;;  %v309_v21 = vrot.slane %v300_v14, 4  ;;  %v310_v25 = vrot.slane %v300_v14, 5 }
 0x203   :  { %v319_v22 = vadd.f32 %v304_v15, %v1240_v44  ;;  %v320_v23 = vadd.f32 %v305_v16, %v1243_v48  ;;  %v322_v24 = vadd.f32 %v306_v17, %v1255_v58  ;;  %v323_v26 = vadd.f32 %v307_v18, %v1261_v63 }
 0x204   :  { %830 = vtanh.f32 %v321_v20  ;;  %v324_v27 = vadd.f32 %v308_v19, %v1267_v4  ;;  %v325_v28 = vadd.f32 %v309_v21, %v1273_v9  ;;  %v326_v29 = vadd.f32 %v310_v25, %v1279_v13 }
 0x205   :  { %832 = vtanh.f32 %v319_v22 }
 0x206   :  { %834 = vtanh.f32 %v320_v23 }
 0x207   :  { %836 = vtanh.f32 %v322_v24 }
 0x208   :  { %838 = vtanh.f32 %v323_v26 }
 0x209   :  { %840 = vtanh.f32 %v324_v27 }
 0x20a   :  { %v831_v30 = vpop.eup %830  ;;  %842 = vtanh.f32 %v325_v28 }
 0x20b   :  { %v833_v31 = vpop.eup %832  ;;  %337 = vst [vmem:[%s1577_s4 + $0x10] sm:$0x4] %v831_v30  ;;  %844 = vtanh.f32 %v326_v29 }
 0x20c   :  { %v835_v32 = vpop.eup %834  ;;  %335 = vst [vmem:[%s1577_s4] sm:$0x4] %v833_v31  ;;  %v351_v33 = vrot.slane %v833_v31, 2 }
 0x20d   :  { %v837_v34 = vpop.eup %836  ;;  %336 = vst [vmem:[%s1577_s4 + $0x8] sm:$0x4] %v835_v32  ;;  %v352_v35 = vrot.slane %v835_v32, 1 }
 0x20e   :  { %v839_v36 = vpop.eup %838  ;;  %338 = vst [vmem:[%s1577_s4 + $0x18] sm:$0x4] %v837_v34  ;;  %v355_v39 = vrot.slane %v837_v34, 7 }
 0x20f   :  { %v841_v37 = vpop.eup %840  ;;  %339 = vst [vmem:[%s1577_s4 + $0x20] sm:$0x4] %v839_v36  ;;  %v353_v38 = vsel %vm179_vm0, %v352_v35, %v351_v33  ;;  %v357_v42 = vrot.slane %v839_v36, 6 }
 0x210   :  { %v843_v40 = vpop.eup %842  ;;  %340 = vst [vmem:[%s1577_s4 + $0x28] sm:$0x4] %v841_v37  ;;  %v354_v41 = vsel %vm182_vm1, %v831_v30, %v353_v38  ;;  %v359_v46 = vrot.slane %v841_v37, 5 }
 0x211   :  { %v845_v43 = vpop.eup %844  ;;  %341 = vst [vmem:[%s1577_s4 + $0x30] sm:$0x4] %v843_v40  ;;  %v356_v45 = vsel %vm185_vm2, %v355_v39, %v354_v41  ;;  %v361_v49 = vrot.slane %v843_v40, 4 }
 0x212   :  { %342 = vst [vmem:[%s1577_s4 + $0x38] sm:$0x4] %v845_v43  ;;  %v358_v47 = vsel %vm188_vm3, %v357_v42, %v356_v45  ;;  %v363_v51 = vrot.slane %v845_v43, 3 }
 0x213   :  { %v360_v50 = vsel %vm191_vm4, %v359_v46, %v358_v47 }
 0x214   :  { %v362_v52 = vsel %vm194_vm5, %v361_v49, %v360_v50 }
 0x215   :  { %v364_v54 = vsel %vm197_vm6, %v363_v51, %v362_v52 }
 0x216   :  { %382 = vmatmul.f32.vlgmr.msrb.gmra.mxu1 %v364_v54 }
 0x293   :  { %v383_v55 = vpop.f32.mrf.mxu1 }
 0x294   :  { %v387_v56 = vrot.slane %v383_v55, 5  ;;  %v388_v57 = vrot.slane %v383_v55, 6  ;;  %v389_v59 = vrot.slane %v383_v55, 7  ;;  %v390_v60 = vrot.slane %v383_v55, 1 }
 0x295   :  { %v391_v61 = vrot.slane %v383_v55, 2  ;;  %v405_v62 = vadd.f32 %v383_v55, %v1255_v58  ;;  %v392_v0 = vrot.slane %v383_v55, 3  ;;  %v393_v5 = vrot.slane %v383_v55, 4 }
 0x296   :  { %v402_v1 = vadd.f32 %v387_v56, %v1240_v44  ;;  %v403_v2 = vadd.f32 %v388_v57, %v1243_v48  ;;  %v404_v3 = vadd.f32 %v389_v59, %v1249_v53  ;;  %v406_v6 = vadd.f32 %v390_v60, %v1261_v63 }
 0x297   :  { %846 = vtanh.f32 %v405_v62  ;;  %v407_v7 = vadd.f32 %v391_v61, %v1267_v4  ;;  %v408_v8 = vadd.f32 %v392_v0, %v1273_v9  ;;  %v409_v10 = vadd.f32 %v393_v5, %v1279_v13 }
 0x298   :  { %848 = vtanh.f32 %v402_v1 }
 0x299   :  { %850 = vtanh.f32 %v403_v2 }
 0x29a   :  { %852 = vtanh.f32 %v404_v3 }
 0x29b   :  { %854 = vtanh.f32 %v406_v6 }
 0x29c   :  { %856 = vtanh.f32 %v407_v7 }
 0x29d   :  { %v847_v11 = vpop.eup %846  ;;  %858 = vtanh.f32 %v408_v8 }
 0x29e   :  { %v849_v12 = vpop.eup %848  ;;  %421 = vst [vmem:[%s1577_s4 + $0x18] sm:$0x8] %v847_v11  ;;  %860 = vtanh.f32 %v409_v10 }
 0x29f   :  { %v851_v14 = vpop.eup %850  ;;  %418 = vst [vmem:[%s1577_s4] sm:$0x8] %v849_v12  ;;  %v434_v15 = vrot.slane %v849_v12, 3 }
 0x2a0   :  { %v853_v16 = vpop.eup %852  ;;  %419 = vst [vmem:[%s1577_s4 + $0x8] sm:$0x8] %v851_v14  ;;  %v435_v17 = vrot.slane %v851_v14, 2 }
 0x2a1   :  { %v855_v18 = vpop.eup %854  ;;  %420 = vst [vmem:[%s1577_s4 + $0x10] sm:$0x8] %v853_v16  ;;  %v437_v19 = vrot.slane %v853_v16, 1 }
 0x2a2   :  { %v857_v20 = vpop.eup %856  ;;  %422 = vst [vmem:[%s1577_s4 + $0x20] sm:$0x8] %v855_v18  ;;  %v436_v21 = vsel %vm179_vm0, %v435_v17, %v434_v15  ;;  %v440_v24 = vrot.slane %v855_v18, 7 }
 0x2a3   :  { %v859_v22 = vpop.eup %858  ;;  %423 = vst [vmem:[%s1577_s4 + $0x28] sm:$0x8] %v857_v20  ;;  %v438_v23 = vsel %vm182_vm1, %v437_v19, %v436_v21  ;;  %v442_v27 = vrot.slane %v857_v20, 6 }
 0x2a4   :  { %v861_v25 = vpop.eup %860  ;;  %424 = vst [vmem:[%s1577_s4 + $0x30] sm:$0x8] %v859_v22  ;;  %v439_v26 = vsel %vm185_vm2, %v847_v11, %v438_v23  ;;  %v444_v29 = vrot.slane %v859_v22, 5 }
 0x2a5   :  { %425 = vst [vmem:[%s1577_s4 + $0x38] sm:$0x8] %v861_v25  ;;  %v441_v28 = vsel %vm188_vm3, %v440_v24, %v439_v26  ;;  %v446_v31 = vrot.slane %v861_v25, 4 }
 0x2a6   :  { %v443_v30 = vsel %vm191_vm4, %v442_v27, %v441_v28 }
 0x2a7   :  { %v445_v32 = vsel %vm194_vm5, %v444_v29, %v443_v30 }
 0x2a8   :  { %v447_v33 = vsel %vm197_vm6, %v446_v31, %v445_v32 }
 0x2a9   :  { %465 = vmatmul.f32.vlgmr.msrb.gmra.mxu2 %v447_v33 }
 0x32c   :  { %v466_v34 = vpop.f32.mrf.mxu2 }
 0x32d   :  { %v470_v35 = vrot.slane %v466_v34, 4  ;;  %v471_v36 = vrot.slane %v466_v34, 5  ;;  %v472_v37 = vrot.slane %v466_v34, 6  ;;  %v473_v38 = vrot.slane %v466_v34, 7 }
 0x32e   :  { %v474_v39 = vrot.slane %v466_v34, 1  ;;  %v475_v40 = vrot.slane %v466_v34, 2  ;;  %v489_v41 = vadd.f32 %v466_v34, %v1261_v63  ;;  %v476_v42 = vrot.slane %v466_v34, 3 }
 0x32f   :  { %v485_v43 = vadd.f32 %v470_v35, %v1240_v44  ;;  %v486_v45 = vadd.f32 %v471_v36, %v1243_v48  ;;  %v487_v46 = vadd.f32 %v472_v37, %v1249_v53  ;;  %v488_v47 = vadd.f32 %v473_v38, %v1255_v58 }
 0x330   :  { %862 = vtanh.f32 %v489_v41  ;;  %v490_v49 = vadd.f32 %v474_v39, %v1267_v4  ;;  %v491_v50 = vadd.f32 %v475_v40, %v1273_v9  ;;  %v492_v51 = vadd.f32 %v476_v42, %v1279_v13 }
 0x331   :  { %864 = vtanh.f32 %v485_v43 }
 0x332   :  { %866 = vtanh.f32 %v486_v45 }
 0x333   :  { %868 = vtanh.f32 %v487_v46 }
 0x334   :  { %870 = vtanh.f32 %v488_v47 }
 0x335   :  { %872 = vtanh.f32 %v490_v49 }
 0x336   :  { %v863_v52 = vpop.eup %862  ;;  %874 = vtanh.f32 %v491_v50 }
 0x337   :  { %v865_v54 = vpop.eup %864  ;;  %505 = vst [vmem:[%s1577_s4 + $0x20] sm:$0x10] %v863_v52  ;;  %876 = vtanh.f32 %v492_v51 }
 0x338   :  { %v867_v55 = vpop.eup %866  ;;  %501 = vst [vmem:[%s1577_s4] sm:$0x10] %v865_v54  ;;  %v517_v56 = vrot.slane %v865_v54, 4 }
 0x339   :  { %v869_v57 = vpop.eup %868  ;;  %502 = vst [vmem:[%s1577_s4 + $0x8] sm:$0x10] %v867_v55  ;;  %v518_v59 = vrot.slane %v867_v55, 3 }
 0x33a   :  { %v871_v60 = vpop.eup %870  ;;  %503 = vst [vmem:[%s1577_s4 + $0x10] sm:$0x10] %v869_v57  ;;  %v520_v61 = vrot.slane %v869_v57, 2 }
 0x33b   :  { %v873_v62 = vpop.eup %872  ;;  %504 = vst [vmem:[%s1577_s4 + $0x18] sm:$0x10] %v871_v60  ;;  %v519_v0 = vsel %vm179_vm0, %v518_v59, %v517_v56  ;;  %v522_v1 = vrot.slane %v871_v60, 1 }
 0x33c   :  { %v875_v2 = vpop.eup %874  ;;  %506 = vst [vmem:[%s1577_s4 + $0x28] sm:$0x10] %v873_v62  ;;  %v521_v3 = vsel %vm182_vm1, %v520_v61, %v519_v0  ;;  %v525_v7 = vrot.slane %v873_v62, 7 }
 0x33d   :  { %v877_v5 = vpop.eup %876  ;;  %507 = vst [vmem:[%s1577_s4 + $0x30] sm:$0x10] %v875_v2  ;;  %v523_v6 = vsel %vm185_vm2, %v522_v1, %v521_v3  ;;  %v527_v10 = vrot.slane %v875_v2, 6 }
 0x33e   :  { %508 = vst [vmem:[%s1577_s4 + $0x38] sm:$0x10] %v877_v5  ;;  %v524_v8 = vsel %vm188_vm3, %v863_v52, %v523_v6  ;;  %v529_v12 = vrot.slane %v877_v5, 5 }
 0x33f   :  { %v526_v11 = vsel %vm191_vm4, %v525_v7, %v524_v8 }
 0x340   :  { %v528_v14 = vsel %vm194_vm5, %v527_v10, %v526_v11 }
 0x341   :  { %v530_v15 = vsel %vm197_vm6, %v529_v12, %v528_v14 }
 0x342   :  { %548 = vmatmul.f32.vlgmr.msrb.gmra.mxu3 %v530_v15 }
 0x3c5   :  { %v549_v16 = vpop.f32.mrf.mxu3 }
 0x3c6   :  { %v553_v17 = vrot.slane %v549_v16, 3  ;;  %v554_v18 = vrot.slane %v549_v16, 4  ;;  %v555_v19 = vrot.slane %v549_v16, 5  ;;  %v556_v20 = vrot.slane %v549_v16, 6 }
 0x3c7   :  { %v557_v21 = vrot.slane %v549_v16, 7  ;;  %v558_v22 = vrot.slane %v549_v16, 1  ;;  %v573_v23 = vadd.f32 %v549_v16, %v1267_v4  ;;  %v559_v24 = vrot.slane %v549_v16, 2 }
 0x3c8   :  { %v568_v25 = vadd.f32 %v553_v17, %v1240_v44  ;;  %v569_v26 = vadd.f32 %v554_v18, %v1243_v48  ;;  %v570_v27 = vadd.f32 %v555_v19, %v1249_v53  ;;  %v571_v28 = vadd.f32 %v556_v20, %v1255_v58 }
 0x3c9   :  { %878 = vtanh.f32 %v573_v23  ;;  %v572_v29 = vadd.f32 %v557_v21, %v1261_v63  ;;  %v574_v30 = vadd.f32 %v558_v22, %v1273_v9  ;;  %v575_v31 = vadd.f32 %v559_v24, %v1279_v13 }
 0x3ca   :  { %880 = vtanh.f32 %v568_v25 }
 0x3cb   :  { %882 = vtanh.f32 %v569_v26 }
 0x3cc   :  { %884 = vtanh.f32 %v570_v27 }
 0x3cd   :  { %886 = vtanh.f32 %v571_v28 }
 0x3ce   :  { %888 = vtanh.f32 %v572_v29 }
 0x3cf   :  { %v879_v32 = vpop.eup %878  ;;  %890 = vtanh.f32 %v574_v30 }
 0x3d0   :  { %v881_v33 = vpop.eup %880  ;;  %589 = vst [vmem:[%s1577_s4 + $0x28] sm:$0x20] %v879_v32  ;;  %892 = vtanh.f32 %v575_v31 }
 0x3d1   :  { %v883_v34 = vpop.eup %882  ;;  %584 = vst [vmem:[%s1577_s4] sm:$0x20] %v881_v33  ;;  %v600_v35 = vrot.slane %v881_v33, 5 }
 0x3d2   :  { %v885_v36 = vpop.eup %884  ;;  %585 = vst [vmem:[%s1577_s4 + $0x8] sm:$0x20] %v883_v34  ;;  %v601_v37 = vrot.slane %v883_v34, 4 }
 0x3d3   :  { %v887_v38 = vpop.eup %886  ;;  %586 = vst [vmem:[%s1577_s4 + $0x10] sm:$0x20] %v885_v36  ;;  %v603_v39 = vrot.slane %v885_v36, 3 }
 0x3d4   :  { %v889_v40 = vpop.eup %888  ;;  %587 = vst [vmem:[%s1577_s4 + $0x18] sm:$0x20] %v887_v38  ;;  %v602_v41 = vsel %vm179_vm0, %v601_v37, %v600_v35  ;;  %v605_v42 = vrot.slane %v887_v38, 2 }
 0x3d5   :  { %v891_v43 = vpop.eup %890  ;;  %588 = vst [vmem:[%s1577_s4 + $0x20] sm:$0x20] %v889_v40  ;;  %v604_v45 = vsel %vm182_vm1, %v603_v39, %v602_v41  ;;  %v607_v46 = vrot.slane %v889_v40, 1 }
 0x3d6   :  { %v893_v47 = vpop.eup %892  ;;  %590 = vst [vmem:[%s1577_s4 + $0x30] sm:$0x20] %v891_v43  ;;  %v606_v49 = vsel %vm185_vm2, %v605_v42, %v604_v45  ;;  %v610_v51 = vrot.slane %v891_v43, 7 }
 0x3d7   :  { %591 = vst [vmem:[%s1577_s4 + $0x38] sm:$0x20] %v893_v47  ;;  %v608_v50 = vsel %vm188_vm3, %v607_v46, %v606_v49  ;;  %v612_v54 = vrot.slane %v893_v47, 6 }
 0x3d8   :  { %v609_v52 = vsel %vm191_vm4, %v879_v32, %v608_v50 }
 0x3d9   :  { %v611_v55 = vsel %vm194_vm5, %v610_v51, %v609_v52 }
 0x3da   :  { %v613_v56 = vsel %vm197_vm6, %v612_v54, %v611_v55 }
 0x3db   :  { %631 = vmatmul.f32.vlgmr.msrb.gmra.mxu0 %v613_v56 }
 0x458   :  { %v632_v57 = vpop.f32.mrf.mxu0 }
 0x459   :  { %v636_v59 = vrot.slane %v632_v57, 2  ;;  %v637_v60 = vrot.slane %v632_v57, 3  ;;  %v638_v61 = vrot.slane %v632_v57, 4  ;;  %v639_v62 = vrot.slane %v632_v57, 5 }
 0x45a   :  { %v640_v0 = vrot.slane %v632_v57, 6  ;;  %v641_v1 = vrot.slane %v632_v57, 7  ;;  %v657_v2 = vadd.f32 %v632_v57, %v1273_v9  ;;  %v642_v3 = vrot.slane %v632_v57, 1 }
 0x45b   :  { %v651_v5 = vadd.f32 %v636_v59, %v1240_v44  ;;  %v652_v6 = vadd.f32 %v637_v60, %v1243_v48  ;;  %v653_v7 = vadd.f32 %v638_v61, %v1249_v53  ;;  %v654_v8 = vadd.f32 %v639_v62, %v1255_v58 }
 0x45c   :  { %894 = vtanh.f32 %v657_v2  ;;  %v655_v10 = vadd.f32 %v640_v0, %v1261_v63  ;;  %v656_v11 = vadd.f32 %v641_v1, %v1267_v4  ;;  %v658_v12 = vadd.f32 %v642_v3, %v1279_v13 }
 0x45d   :  { %896 = vtanh.f32 %v651_v5 }
 0x45e   :  { %898 = vtanh.f32 %v652_v6 }
 0x45f   :  { %900 = vtanh.f32 %v653_v7 }
 0x460   :  { %902 = vtanh.f32 %v654_v8 }
 0x461   :  { %904 = vtanh.f32 %v655_v10 }
 0x462   :  { %v895_v14 = vpop.eup %894  ;;  %906 = vtanh.f32 %v656_v11 }
 0x463   :  { %v897_v15 = vpop.eup %896  ;;  %673 = vst [vmem:[%s1577_s4 + $0x30] sm:$0x40] %v895_v14  ;;  %908 = vtanh.f32 %v658_v12 }
 0x464   :  { %v899_v16 = vpop.eup %898  ;;  %667 = vst [vmem:[%s1577_s4] sm:$0x40] %v897_v15  ;;  %v683_v17 = vrot.slane %v897_v15, 6 }
 0x465   :  { %v901_v18 = vpop.eup %900  ;;  %668 = vst [vmem:[%s1577_s4 + $0x8] sm:$0x40] %v899_v16  ;;  %v684_v19 = vrot.slane %v899_v16, 5 }
 0x466   :  { %v903_v20 = vpop.eup %902  ;;  %669 = vst [vmem:[%s1577_s4 + $0x10] sm:$0x40] %v901_v18  ;;  %v686_v21 = vrot.slane %v901_v18, 4 }
 0x467   :  { %v905_v22 = vpop.eup %904  ;;  %670 = vst [vmem:[%s1577_s4 + $0x18] sm:$0x40] %v903_v20  ;;  %v685_v23 = vsel %vm179_vm0, %v684_v19, %v683_v17  ;;  %v688_v24 = vrot.slane %v903_v20, 3 }
 0x468   :  { %v907_v25 = vpop.eup %906  ;;  %671 = vst [vmem:[%s1577_s4 + $0x20] sm:$0x40] %v905_v22  ;;  %v687_v26 = vsel %vm182_vm1, %v686_v21, %v685_v23  ;;  %v690_v27 = vrot.slane %v905_v22, 2 }
 0x469   :  { %v909_v28 = vpop.eup %908  ;;  %672 = vst [vmem:[%s1577_s4 + $0x28] sm:$0x40] %v907_v25  ;;  %v689_v29 = vsel %vm185_vm2, %v688_v24, %v687_v26  ;;  %v692_v30 = vrot.slane %v907_v25, 1 }
 0x46a   :  { %674 = vst [vmem:[%s1577_s4 + $0x38] sm:$0x40] %v909_v28  ;;  %v691_v31 = vsel %vm188_vm3, %v690_v27, %v689_v29  ;;  %v695_v33 = vrot.slane %v909_v28, 7 }
 0x46b   :  { %v693_v32 = vsel %vm191_vm4, %v692_v30, %v691_v31 }
 0x46c   :  { %v694_v34 = vsel %vm194_vm5, %v895_v14, %v693_v32 }
 0x46d   :  { %v696_v35 = vsel %vm197_vm6, %v695_v33, %v694_v34 }
 0x46e   :  { %714 = vmatmul.f32.vlgmr.msra.gmra.mxu1 %v696_v35 }
 0x4eb   :  { %v715_v36 = vpop.f32.mrf.mxu1 }
 0x4ec   :  { %v719_v37 = vrot.slane %v715_v36, 1  ;;  %v720_v38 = vrot.slane %v715_v36, 2  ;;  %v721_v39 = vrot.slane %v715_v36, 3  ;;  %v722_v40 = vrot.slane %v715_v36, 4 }
 0x4ed   :  { %v723_v41 = vrot.slane %v715_v36, 5  ;;  %v724_v42 = vrot.slane %v715_v36, 6  ;;  %v741_v43 = vadd.f32 %v715_v36, %v1279_v13  ;;  %v725_v45 = vrot.slane %v715_v36, 7 }
 0x4ee   :  { %v734_v46 = vadd.f32 %v719_v37, %v1240_v44  ;;  %v735_v47 = vadd.f32 %v720_v38, %v1243_v48  ;;  %v736_v49 = vadd.f32 %v721_v39, %v1249_v53  ;;  %v737_v50 = vadd.f32 %v722_v40, %v1255_v58 }
 0x4ef   :  { %910 = vtanh.f32 %v741_v43  ;;  %v738_v51 = vadd.f32 %v723_v41, %v1261_v63  ;;  %v739_v52 = vadd.f32 %v724_v42, %v1267_v4  ;;  %v740_v54 = vadd.f32 %v725_v45, %v1273_v9 }
 0x4f0   :  { %912 = vtanh.f32 %v734_v46 }
 0x4f1   :  { %914 = vtanh.f32 %v735_v47 }
 0x4f2   :  { %916 = vtanh.f32 %v736_v49 }
 0x4f3   :  { %918 = vtanh.f32 %v737_v50 }
 0x4f4   :  { %920 = vtanh.f32 %v738_v51 }
 0x4f5   :  { %v911_v13 = vpop.eup %910  ;;  %922 = vtanh.f32 %v739_v52 }
 0x4f6   :  { %v913_v44 = vpop.eup %912  ;;  %924 = vtanh.f32 %v740_v54  ;;  %757 = vst [vmem:[%s1577_s4 + $0x38] sm:$0x80] %v911_v13  ;;  %v777_v3 = vrot.slane %v911_v13, 1 }
 0x4f7   :  { %v915_v48 = vpop.eup %914  ;;  %750 = vst [vmem:[%s1577_s4] sm:$0x80] %v913_v44 }
 0x4f8   :  { %v917_v53 = vpop.eup %916  ;;  %751 = vst [vmem:[%s1577_s4 + $0x8] sm:$0x80] %v915_v48  ;;  %v766_v58 = vrot.slane %v915_v48, 7 }
 0x4f9   :  { %v919_v63 = vpop.eup %918  ;;  %752 = vst [vmem:[%s1577_s4 + $0x10] sm:$0x80] %v917_v53  ;;  %v767_v4 = vrot.slane %v917_v53, 6 }
 0x4fa   :  { %v921_v9 = vpop.eup %920  ;;  %753 = vst [vmem:[%s1577_s4 + $0x18] sm:$0x80] %v919_v63  ;;  %v769_v55 = vrot.slane %v919_v63, 5 }
 0x4fb   :  { %v923_v56 = vpop.eup %922  ;;  %754 = vst [vmem:[%s1577_s4 + $0x20] sm:$0x80] %v921_v9  ;;  %v768_v57 = vsel %vm179_vm0, %v767_v4, %v766_v58  ;;  %v771_v59 = vrot.slane %v921_v9, 4 }
 0x4fc   :  { %v925_v60 = vpop.eup %924  ;;  %755 = vst [vmem:[%s1577_s4 + $0x28] sm:$0x80] %v923_v56  ;;  %v770_v61 = vsel %vm182_vm1, %v769_v55, %v768_v57  ;;  %v773_v62 = vrot.slane %v923_v56, 3 }
 0x4fd   :  { %756 = vst [vmem:[%s1577_s4 + $0x30] sm:$0x80] %v925_v60  ;;  %v772_v0 = vsel %vm185_vm2, %v771_v59, %v770_v61  ;;  %v775_v1 = vrot.slane %v925_v60, 2 }
 0x4fe   :  { %v774_v2 = vsel %vm188_vm3, %v773_v62, %v772_v0  ;;  %786 = vst [vmem:[%s1578_s5 - $0x7] sm:$0x80] %v913_v44 }
 0x4ff   :  { %v776_v5 = vsel %vm191_vm4, %v775_v1, %v774_v2 }
 0x500   :  { %v778_v6 = vsel %vm194_vm5, %v777_v3, %v776_v5 }
 0x501   :  { %787 = vst [vmem:[%s1578_s5 + $0x1] sm:$0x7f] %v778_v6 }

</bundles_post_ra>
